<compile_context>
chip_gen: v7x
topology: tpu7x:2x2x1
jax: 0.10.0
libtpu: 0.0.40
codegen_flags: <defaults>
</compile_context>

<pallas_src>
import functools

import jax
import jax.numpy as jnp
from jax.experimental import pallas as pl
from jax.experimental.pallas import tpu as pltpu

STATE_DIM = 24        # BipedalWalker-v3 observation dim
ACTION_DIM = 4        # BipedalWalker-v3 action dim
H1, H2 = 400, 300     # logical hidden sizes (as in the PyTorch module)
STATE_PAD = 32        # layer-1 contraction dim padded 24->32 (bf16 packing)
H1_PAD, H2_PAD = 512, 384   # hidden dims padded to multiples of 128
OUT_PAD = 128               # layer-3 matmul N dim (one vreg of lanes)
MAX_ACTION = 1.0
MAX_BATCH_TILE = 1024       # adaptive tile cap; VMEM stays tiny (<8 MiB)


def _round_up(x, m):
    return pl.cdiv(x, m) * m


def _choose_batch_tile(batch, max_tile=MAX_BATCH_TILE):
    """Pick the batch tile.

    * As large as possible (fewest ~0.35 us grid steps), capped at `max_tile`.
    * >= 2 grid blocks whenever the batch allows, so the "parallel" batch axis
      can shard across both TensorCores on v7x (neutral on v5e/v6e).
    * Snapped up to multiples of 256 when big (fills the 256-wide MXU M dim on
      v6e/v7x), otherwise multiples of 8 (sublane granularity).  Padding a few
      hundred extra rows is cheaper than an extra grid step for this network.
    """
    pb8 = int(_round_up(batch, 8))
    if pb8 <= 16:
        return pb8                      # too tiny to split across cores
    half = int(pl.cdiv(pb8, 2))
    tb = min(int(max_tile), half)
    snap = 256 if tb >= 256 else 8
    return int(min(int(_round_up(tb, snap)), int(max_tile)))


def _actor_kernel(x_ref, w1_ref, b1_ref, w2_ref, b2_ref, w3_ref, b3_ref,
                  o_ref, *, max_action):
    # One batch tile per grid step: 3 MXU matmuls (f32 accumulate) + VPU/EUP
    # bias/ReLU/tanh epilogue in f32.  Activations are cast to the weight
    # dtype (bf16 on the fast path) only at the MXU inputs.
    x = x_ref[...].astype(w1_ref.dtype)

    h1 = jnp.dot(x, w1_ref[...], preferred_element_type=jnp.float32)
    h1 = jnp.maximum(h1 + b1_ref[...], 0.0)

    h2 = jnp.dot(h1.astype(w2_ref.dtype), w2_ref[...],
                 preferred_element_type=jnp.float32)
    h2 = jnp.maximum(h2 + b2_ref[...], 0.0)

    h3 = jnp.dot(h2.astype(w3_ref.dtype), w3_ref[...],
                 preferred_element_type=jnp.float32)
    out = jnp.tanh(h3 + b3_ref[...])
    if max_action != 1.0:           # trace-time constant: skip mul when ==1
        out = out * max_action
    # Lane-slice to the real action dim at the store (one masked vst per tile,
    # same count as the old 128-wide slab, but no post-kernel slice pass).
    o_ref[...] = out[:, :o_ref.shape[1]].astype(o_ref.dtype)


def actor_forward(x, packed_params, max_action=MAX_ACTION, *,
                  batch_tile=MAX_BATCH_TILE):
    """x: (B, STATE_DIM) f32 -> (B, ACTION_DIM) f32.

    `packed_params` must come from `pack_params` (padded, (in, out) layout).
    """
    w1, b1, w2, b2, w3, b3 = packed_params
    batch = x.shape[0]

    tb = _choose_batch_tile(batch, batch_tile)
    pb = int(_round_up(batch, tb))
    # Pad batch tail to a whole number of tiles and features 24 -> 32.
    x = jnp.pad(x, ((0, pb - batch), (0, STATE_PAD - x.shape[1])))
    n_blocks = pb // tb

    resident = lambda a: pl.BlockSpec(a.shape, lambda i: (0, 0))

    param_bytes = sum(int(a.size) * a.dtype.itemsize for a in packed_params)
    cost = pl.CostEstimate(
        flops=2 * pb * (STATE_PAD * H1_PAD + H1_PAD * H2_PAD + H2_PAD * OUT_PAD),
        transcendentals=pb * OUT_PAD,
        bytes_accessed=int(x.size) * x.dtype.itemsize
                       + pb * ACTION_DIM * 4 + param_bytes,
    )

    out = pl.pallas_call(
        functools.partial(_actor_kernel, max_action=float(max_action)),
        out_shape=jax.ShapeDtypeStruct((pb, ACTION_DIM), jnp.float32),
        grid=(n_blocks,),
        in_specs=[
            pl.BlockSpec((tb, STATE_PAD), lambda i: (i, 0)),  # x streams
            resident(w1), resident(b1),                        # weights stay
            resident(w2), resident(b2),
            resident(w3), resident(b3),
        ],
        out_specs=pl.BlockSpec((tb, ACTION_DIM), lambda i: (i, 0)),
        compiler_params=pltpu.CompilerParams(
            dimension_semantics=("parallel",)),
        cost_estimate=cost,
    )(x, w1, b1, w2, b2, w3, b3)

    return out if pb == batch else out[:batch]


def init_actor_params(key, state_dim=STATE_DIM, action_dim=ACTION_DIM):
    """Unpadded params mirroring nn.Linear default init: U(+-1/sqrt(fan_in)).

    Weights stored (in, out) — transposed vs. PyTorch's (out, in).
    """
    def linear(k, fan_in, fan_out):
        kw, kb = jax.random.split(k)
        bound = 1.0 / jnp.sqrt(fan_in)
        w = jax.random.uniform(kw, (fan_in, fan_out), jnp.float32, -bound, bound)
        b = jax.random.uniform(kb, (1, fan_out), jnp.float32, -bound, bound)
        return w, b

    k1, k2, k3 = jax.random.split(key, 3)
    w1, b1 = linear(k1, state_dim, H1)
    w2, b2 = linear(k2, H1, H2)
    w3, b3 = linear(k3, H2, action_dim)
    return (w1, b1, w2, b2, w3, b3)


def pack_params(raw_params, matmul_dtype=jnp.bfloat16):
    """Zero-pad to (8,128)-friendly shapes.

    Weights cast to `matmul_dtype`: bfloat16 is the recommended MXU operand
    dtype on v5e, v6e and v7x alike (accumulation and the bias/ReLU/tanh
    epilogue stay f32 inside the kernel).  Pass jnp.float32 for exact parity
    with the f32 PyTorch module.  Biases are kept f32.
    """
    w1, b1, w2, b2, w3, b3 = raw_params

    def pad(a, shape):
        out = jnp.zeros(shape, a.dtype)
        return out.at[:a.shape[0], :a.shape[1]].set(a)

    w1p = pad(w1, (STATE_PAD, H1_PAD)).astype(matmul_dtype)
    b1p = pad(b1, (1, H1_PAD))
    w2p = pad(w2, (H1_PAD, H2_PAD)).astype(matmul_dtype)
    b2p = pad(b2, (1, H2_PAD))
    w3p = pad(w3, (H2_PAD, OUT_PAD)).astype(matmul_dtype)
    b3p = pad(b3, (1, OUT_PAD))
    return (w1p, b1p, w2p, b2p, w3p, b3p)


def actor_reference(x, raw_params, max_action=MAX_ACTION):
    w1, b1, w2, b2, w3, b3 = raw_params
    h = jnp.maximum(x @ w1 + b1, 0.0)
    h = jnp.maximum(h @ w2 + b2, 0.0)
    return jnp.tanh(h @ w3 + b3) * max_action


if __name__ == "__main__":
    key = jax.random.PRNGKey(0)
    kp, kx1, kx2 = jax.random.split(key, 3)

    raw_params = init_actor_params(kp)
    params_f32 = pack_params(raw_params, jnp.float32)

    # 1) Small-batch sanity (batch=2, as the module spec implies) — exact f32.
    x_small = jax.random.normal(kx1, (2, STATE_DIM), jnp.float32)
    out_small = jax.block_until_ready(actor_forward(x_small, params_f32))
    ref_small = actor_reference(x_small, raw_params)
    assert out_small.shape == (2, ACTION_DIM)
    assert jnp.allclose(out_small, ref_small, atol=1e-5, rtol=1e-5), \
        "f32 small-batch mismatch vs reference"

    # 2) Larger batch exercising the multi-block grid + non-multiple tail
    #    (tb snaps to 512 -> 2 blocks, feeds both TCs on v7x).
    x_big = jax.random.normal(kx2, (1000, STATE_DIM), jnp.float32)
    out_big = jax.block_until_ready(actor_forward(x_big, params_f32))
    ref_big = actor_reference(x_big, raw_params)
    assert out_big.shape == (1000, ACTION_DIM)
    assert jnp.allclose(out_big, ref_big, atol=1e-5, rtol=1e-5), \
        "f32 tiled-batch mismatch vs reference"

    # 3) bf16 MXU operands (recommended fast path on v5e/v6e/v7x), f32
    #    accumulate + epilogue.  NOTE: loose tolerance — bf16 operand rounding
    #    is accepted here, acceptable for an RL policy, not bit-exactness.
    params_bf16 = pack_params(raw_params, jnp.bfloat16)
    out_bf16 = jax.block_until_ready(actor_forward(x_big, params_bf16))
    assert jnp.allclose(out_bf16, ref_big, atol=5e-2, rtol=5e-2), \
        "bf16 matmul path deviates too much from f32 reference"

    print("KERNEL_OK")
</pallas_src>

<mosaic_0001>
module attributes {stable_mosaic.version = 11 : i64} {
  func.func @_actor_kernel(%arg0: i32, %arg1: memref<8x32xf32, #tpu.memory_space<vmem>>, %arg2: memref<32x512xf32, #tpu.memory_space<vmem>>, %arg3: memref<1x512xf32, #tpu.memory_space<vmem>>, %arg4: memref<512x384xf32, #tpu.memory_space<vmem>>, %arg5: memref<1x384xf32, #tpu.memory_space<vmem>>, %arg6: memref<384x128xf32, #tpu.memory_space<vmem>>, %arg7: memref<1x128xf32, #tpu.memory_space<vmem>>, %arg8: memref<8x4xf32, #tpu.memory_space<vmem>>) attributes {dimension_semantics = [#tpu.dimension_semantics<parallel>], iteration_bounds = array<i64: 1>, scalar_prefetch = 0 : i64, scratch_operands = 0 : i64, tpu.core_type = #tpu.core_type<tc>, window_params = [{transform_indices = @transform_0, window_bounds = array<i64: 8, 32>}, {pipeline_mode = #tpu.pipeline_mode<synchronous>, transform_indices = @transform_1, window_bounds = array<i64: 32, 512>}, {pipeline_mode = #tpu.pipeline_mode<synchronous>, transform_indices = @transform_2, window_bounds = array<i64: 1, 512>}, {pipeline_mode = #tpu.pipeline_mode<synchronous>, transform_indices = @transform_3, window_bounds = array<i64: 512, 384>}, {pipeline_mode = #tpu.pipeline_mode<synchronous>, transform_indices = @transform_4, window_bounds = array<i64: 1, 384>}, {pipeline_mode = #tpu.pipeline_mode<synchronous>, transform_indices = @transform_5, window_bounds = array<i64: 384, 128>}, {pipeline_mode = #tpu.pipeline_mode<synchronous>, transform_indices = @transform_6, window_bounds = array<i64: 1, 128>}, {transform_indices = @transform_7, window_bounds = array<i64: 8, 4>}]} {
    %c0 = arith.constant 0 : index
    %c0_0 = arith.constant 0 : index
    %0 = vector.load %arg1[%c0, %c0_0] : memref<8x32xf32, #tpu.memory_space<vmem>>, vector<8x32xf32>
    %c0_1 = arith.constant 0 : index
    %c0_2 = arith.constant 0 : index
    %1 = vector.load %arg2[%c0_1, %c0_2] : memref<32x512xf32, #tpu.memory_space<vmem>>, vector<32x512xf32>
    %cst = arith.constant dense<0.000000e+00> : vector<8x512xf32>
    %2 = tpu.matmul %0, %1, %cst {dimension_numbers = #tpu.dot_dimension_numbers<[1], [0], [0], [1], [0, 0, 1, 1], [], []>} : vector<8x32xf32>, vector<32x512xf32>, vector<8x512xf32> -> vector<8x512xf32>
    %c0_3 = arith.constant 0 : index
    %c0_4 = arith.constant 0 : index
    %3 = vector.load %arg3[%c0_3, %c0_4] : memref<1x512xf32, #tpu.memory_space<vmem>>, vector<1x512xf32>
    %4 = vector.broadcast %3 : vector<1x512xf32> to vector<8x512xf32>
    %5 = arith.addf %2, %4 : vector<8x512xf32>
    %cst_5 = arith.constant 0.000000e+00 : f32
    %6 = vector.broadcast %cst_5 : f32 to vector<8x512xf32>
    %7 = arith.maximumf %5, %6 : vector<8x512xf32>
    %c0_6 = arith.constant 0 : index
    %c0_7 = arith.constant 0 : index
    %8 = vector.load %arg4[%c0_6, %c0_7] : memref<512x384xf32, #tpu.memory_space<vmem>>, vector<512x384xf32>
    %cst_8 = arith.constant dense<0.000000e+00> : vector<8x384xf32>
    %9 = tpu.matmul %7, %8, %cst_8 {dimension_numbers = #tpu.dot_dimension_numbers<[1], [0], [0], [1], [0, 0, 1, 1], [], []>} : vector<8x512xf32>, vector<512x384xf32>, vector<8x384xf32> -> vector<8x384xf32>
    %c0_9 = arith.constant 0 : index
    %c0_10 = arith.constant 0 : index
    %10 = vector.load %arg5[%c0_9, %c0_10] : memref<1x384xf32, #tpu.memory_space<vmem>>, vector<1x384xf32>
    %11 = vector.broadcast %10 : vector<1x384xf32> to vector<8x384xf32>
    %12 = arith.addf %9, %11 : vector<8x384xf32>
    %cst_11 = arith.constant 0.000000e+00 : f32
    %13 = vector.broadcast %cst_11 : f32 to vector<8x384xf32>
    %14 = arith.maximumf %12, %13 : vector<8x384xf32>
    %c0_12 = arith.constant 0 : index
    %c0_13 = arith.constant 0 : index
    %15 = vector.load %arg6[%c0_12, %c0_13] : memref<384x128xf32, #tpu.memory_space<vmem>>, vector<384x128xf32>
    %cst_14 = arith.constant dense<0.000000e+00> : vector<8x128xf32>
    %16 = tpu.matmul %14, %15, %cst_14 {dimension_numbers = #tpu.dot_dimension_numbers<[1], [0], [0], [1], [0, 0, 1, 1], [], []>} : vector<8x384xf32>, vector<384x128xf32>, vector<8x128xf32> -> vector<8x128xf32>
    %c0_15 = arith.constant 0 : index
    %c0_16 = arith.constant 0 : index
    %17 = vector.load %arg7[%c0_15, %c0_16] : memref<1x128xf32, #tpu.memory_space<vmem>>, vector<1x128xf32>
    %18 = vector.broadcast %17 : vector<1x128xf32> to vector<8x128xf32>
    %19 = arith.addf %16, %18 : vector<8x128xf32>
    %20 = math.tanh %19 : vector<8x128xf32>
    %21 = vector.extract_strided_slice %20 {offsets = [0, 0], sizes = [8, 4], strides = [1, 1]} : vector<8x128xf32> to vector<8x4xf32>
    %c0_17 = arith.constant 0 : index
    %c0_18 = arith.constant 0 : index
    %22 = vector.load %arg8[%c0_17, %c0_18] : memref<8x4xf32, #tpu.memory_space<vmem>>, vector<8x4xf32>
    tpu.vector_store %arg8[%c0_17, %c0_18], %21 {strides = array<i32>} : memref<8x4xf32, #tpu.memory_space<vmem>>, vector<8x4xf32>,
    return
  }
  func.func @transform_0(%arg0: i32) -> (i32, i32) {
    %c0_i32 = arith.constant 0 : i32
    %c0_i32_0 = arith.constant 0 : i32
    return %arg0, %c0_i32 : i32, i32
  }
  func.func @transform_1(%arg0: i32) -> (i32, i32) {
    %c0_i32 = arith.constant 0 : i32
    %c0_i32_0 = arith.constant 0 : i32
    %c0_i32_1 = arith.constant 0 : i32
    return %c0_i32, %c0_i32_0 : i32, i32
  }
  func.func @transform_2(%arg0: i32) -> (i32, i32) {
    %c0_i32 = arith.constant 0 : i32
    %c0_i32_0 = arith.constant 0 : i32
    %c0_i32_1 = arith.constant 0 : i32
    return %c0_i32, %c0_i32_0 : i32, i32
  }
  func.func @transform_3(%arg0: i32) -> (i32, i32) {
    %c0_i32 = arith.constant 0 : i32
    %c0_i32_0 = arith.constant 0 : i32
    %c0_i32_1 = arith.constant 0 : i32
    return %c0_i32, %c0_i32_0 : i32, i32
  }
  func.func @transform_4(%arg0: i32) -> (i32, i32) {
    %c0_i32 = arith.constant 0 : i32
    %c0_i32_0 = arith.constant 0 : i32
    %c0_i32_1 = arith.constant 0 : i32
    return %c0_i32, %c0_i32_0 : i32, i32
  }
  func.func @transform_5(%arg0: i32) -> (i32, i32) {
    %c0_i32 = arith.constant 0 : i32
    %c0_i32_0 = arith.constant 0 : i32
    %c0_i32_1 = arith.constant 0 : i32
    return %c0_i32, %c0_i32_0 : i32, i32
  }
  func.func @transform_6(%arg0: i32) -> (i32, i32) {
    %c0_i32 = arith.constant 0 : i32
    %c0_i32_0 = arith.constant 0 : i32
    %c0_i32_1 = arith.constant 0 : i32
    return %c0_i32, %c0_i32_0 : i32, i32
  }
  func.func @transform_7(%arg0: i32) -> (i32, i32) {
    %c0_i32 = arith.constant 0 : i32
    %c0_i32_0 = arith.constant 0 : i32
    return %arg0, %c0_i32 : i32, i32
  }
}

</mosaic_0001>

<bundles_post_ra>
// kernel: tpu_custom_call.1
= control target key start
LH: loop header
LB: loop body
LE: loop exit
PB: predicated region body
PF: predicated region fallthrough
CT: control target
= control target key end

     0   :  { %12 = vsyncpa [#allocation3], 0  ;;  %s1652_s0 = inlined_call_operand.hbm [shape: f32[8,32], index: 0, kind: input, shape index: {}]   ;;  %s1653_s1 = inlined_call_operand.hbm [shape: f32[32,512], index: 1, kind: input, shape index: {}]   ;;  %s1654_s2 = inlined_call_operand.vmem [shape: f32[1,512], index: 2, kind: input, shape index: {}]   ;;  %s1655_s3 = inlined_call_operand.hbm [shape: f32[512,384], index: 3, kind: input, shape index: {}]   ;;  %s1656_s4 = inlined_call_operand.vmem [shape: f32[1,384], index: 4, kind: input, shape index: {}]   ;;  %s1657_s5 = inlined_call_operand.hbm [shape: f32[384,128], index: 5, kind: input, shape index: {}]   ;;  %s1658_s6 = inlined_call_operand.vmem [shape: f32[1,128], index: 6, kind: input, shape index: {}]   ;;  %s1659_s7 = inlined_call_operand.vmem [shape: f32[8,4], index: 7, kind: output, shape index: {}]  }
   0x1   :  { %13 = vsyncpa [#allocation5], 0 }
   0x2   :  { %14 = vsyncpa [#allocation8], 0  ;;  %s1504_s24 = smov [#allocation4]   ;;  %s1410_s28 = scalar_lea.hbm %s1653_s1, 2048 }
   0x3   :  { %s30_s25 = sshll.u32 %s1504_s24, 4  ;;  %p1411_p0 = scmp.ne.s32.totalorder %s1653_s1, %s1410_s28  ;;  %s31_s25 = int_to_ptr.vmem [resolvable:$true] %s30_s25 }
   0x4   :  { %p1414_p1 = scmp.lt.u32.totalorder %s1410_s28, %s1653_s1 }
   0x6   :  { %p1416_p2 = pnand %p1414_p1, %p1411_p0 }
   0x8   :  { %1419 = shalt.err (!%p1416_p2)
}
   0x9   :  { %s1420_s10 = scalar_lea.vmem %s31_s25, 2048  ;;  %p1425_p4 = scmp.lt.s32.totalorder %s31_s25, %s31_s25 }
   0xa   :  { %p1421_p3 = scmp.ne.s32.totalorder %s31_s25, %s1420_s10  ;;  %p1426_p5 = scmp.lt.s32.totalorder %s1420_s10, %s1420_s10 }
   0xc   :  { %p1427_p6 = por %p1426_p5, %p1425_p4 }
   0xe   :  { %p1428_p7 = pnand %p1427_p6, %p1421_p3 }
  0x10   :  { %1431 = shalt.err (!%p1428_p7)
}
  0x11   :  { %s1505_s11 = smov 512   ;;  %s1506_s12 = smov 32  }
  0x12   :  { %36 = dma.hbm_to_vmem [thread:$0]  %s1653_s1, 2048, %s31_s25, [#allocation5], %s1505_s11, %s1505_s11, %s1506_s12  }
  0x13   :  { %s1507_s15 = smov [#allocation2]   ;;  %s1508_s17 = smov [#allocation6]  }
  0x14   :  { %s21_s16 = sshll.u32 %s1507_s15, 4  ;;  %s44_s18 = sshll.u32 %s1508_s17, 4  ;;  %s22_s16 = int_to_ptr.vmem [resolvable:$true] %s21_s16  ;;  %s45_s18 = int_to_ptr.vmem [resolvable:$true] %s44_s18 }
  0x15   :  { %s1432_s21 = scalar_lea.hbm %s1652_s0, 128 }
  0x16   :  { %p1433_p8 = scmp.ne.s32.totalorder %s1652_s0, %s1432_s21  ;;  %p1436_p9 = scmp.lt.u32.totalorder %s1432_s21, %s1652_s0 }
  0x18   :  { %p1438_p10 = pnand %p1436_p9, %p1433_p8 }
  0x1a   :  { %1441 = shalt.err (!%p1438_p10)
}
  0x1b   :  { %s1442_s1 = scalar_lea.vmem %s22_s16, 128  ;;  %p1447_p12 = scmp.lt.s32.totalorder %s22_s16, %s22_s16 }
  0x1c   :  { %p1443_p11 = scmp.ne.s32.totalorder %s22_s16, %s1442_s1  ;;  %p1448_p13 = scmp.lt.s32.totalorder %s1442_s1, %s1442_s1 }
  0x1e   :  { %p1449_p0 = por %p1448_p13, %p1447_p12 }
  0x20   :  { %p1450_p1 = pnand %p1449_p0, %p1443_p11 }
  0x22   :  { %1453 = shalt.err (!%p1450_p1)
}
  0x23   :  { %24 = dma.hbm_to_vmem [thread:$0]  %s1652_s0, 128, %s22_s16, [#allocation3]  }
  0x24   :  { %s1454_s30 = scalar_lea.hbm %s1655_s3, 24576 }
  0x25   :  { %p1455_p2 = scmp.ne.s32.totalorder %s1655_s3, %s1454_s30  ;;  %p1458_p3 = scmp.lt.u32.totalorder %s1454_s30, %s1655_s3 }
  0x27   :  { %p1460_p4 = pnand %p1458_p3, %p1455_p2 }
  0x29   :  { %1463 = shalt.err (!%p1460_p4)
}
  0x2a   :  { %s1464_s12 = scalar_lea.vmem %s45_s18, 24576  ;;  %p1469_p6 = scmp.lt.s32.totalorder %s45_s18, %s45_s18 }
  0x2b   :  { %p1465_p5 = scmp.ne.s32.totalorder %s45_s18, %s1464_s12  ;;  %p1470_p7 = scmp.lt.s32.totalorder %s1464_s12, %s1464_s12 }
  0x2d   :  { %p1471_p8 = por %p1470_p7, %p1469_p6 }
  0x2f   :  { %p1472_p9 = pnand %p1471_p8, %p1465_p5 }
  0x31   :  { %1475 = shalt.err (!%p1472_p9)
}
  0x32   :  { %s1509_s0 = smov 384   ;;  %s1510_s13 = smov 24  }
  0x33   :  { %50 = dma.hbm_to_vmem [thread:$0]  %s1655_s3, 24576, %s45_s18, [#allocation5], %s1509_s0, %s1509_s0, %s1510_s13  }
  0x34   :  { %s1511_s16 = smov [#allocation7]   ;;  %s1476_s21 = scalar_lea.hbm %s1657_s5, 6144 }
  0x35   :  { %s58_s17 = sshll.u32 %s1511_s16, 4  ;;  %p1477_p10 = scmp.ne.s32.totalorder %s1657_s5, %s1476_s21  ;;  %s59_s17 = int_to_ptr.vmem [resolvable:$true] %s58_s17 }
  0x36   :  { %p1480_p11 = scmp.lt.u32.totalorder %s1476_s21, %s1657_s5 }
  0x38   :  { %p1482_p12 = pnand %p1480_p11, %p1477_p10 }
  0x3a   :  { %1485 = shalt.err (!%p1482_p12)
}
  0x3b   :  { %s1486_s1 = scalar_lea.vmem %s59_s17, 6144  ;;  %p1491_p0 = scmp.lt.s32.totalorder %s59_s17, %s59_s17 }
  0x3c   :  { %p1487_p13 = scmp.ne.s32.totalorder %s59_s17, %s1486_s1  ;;  %p1492_p1 = scmp.lt.s32.totalorder %s1486_s1, %s1486_s1 }
  0x3e   :  { %p1493_p2 = por %p1492_p1, %p1491_p0 }
  0x40   :  { %p1494_p3 = pnand %p1493_p2, %p1487_p13 }
  0x42   :  { %1497 = shalt.err (!%p1494_p3)
}
  0x43   :  { %s1512_s3 = smov 128   ;;  %s1513_s18 = smov 8  }
  0x44   :  { %64 = dma.hbm_to_vmem [thread:$0]  %s1657_s5, 6144, %s59_s17, [#allocation8], %s1512_s3, %s1512_s3, %s1513_s18  }
  0x45   :  { %1498 = dma.done.wait [#allocation3], 128  }
  0x46   :  { %1499 = vsyncadd [#allocation3], 4294967168 }
  0x47   :  { %1500 = dma.done.wait [#allocation5], 26624  }
  0x48   :  { %1501 = vsyncadd [#allocation5], 4294940672 }
  0x49   :  { %1502 = dma.done.wait [#allocation8], 6144  }
  0x4a   :  { %1503 = vsyncadd [#allocation8], 4294961152  ;;  %v1514_v0 = vmov 0.0   ;;  %v81_v1 = vld [vmem:[#allocation4 + $0x8] sm:$0xff]  ;;  %v80_v3 = vld [vmem:[#allocation4] sm:$0xff]  ;;  %vm118_vm0 = vcmask 261120  }
  0x4b   :  { %186 = vmatprep.mubr.f32.mxu0 %v1514_v0  ;;  %257 = vmatprep.mubr.f32.mxu1 %v1514_v0  ;;  %v85_v2 = vld [vmem:[#allocation4 + $0x28] sm:$0xff]  ;;  %v84_v5 = vld [vmem:[#allocation4 + $0x20] sm:$0xff]  ;;  %v83_v12 = vld [vmem:[#allocation4 + $0x18] sm:$0xff]  ;;  %vm1516_vm1 = vmmov 0   ;;  %vm958_vm2 = vcmask 31744  }
  0x4c   :  { %v1127_v4 = vpack.c.bf16 %v85_v2, %v81_v1  ;;  %v89_v6 = vld [vmem:[#allocation4 + $0x48] sm:$0xff]  ;;  %v1129_v8 = vpack.c.bf16 %v84_v5, %v80_v3  ;;  %v88_v10 = vld [vmem:[#allocation4 + $0x40] sm:$0xff]  ;;  %v87_v13 = vld [vmem:[#allocation4 + $0x38] sm:$0xff] }
  0x4d   :  { %v93_v7 = vld [vmem:[#allocation4 + $0x68] sm:$0xff]  ;;  %v92_v11 = vld [vmem:[#allocation4 + $0x60] sm:$0xff]  ;;  %v82_v14 = vld [vmem:[#allocation4 + $0x10] sm:$0xff]  ;;  %v1135_v16 = vpack.c.bf16 %v87_v13, %v83_v12 }
  0x4e   :  { %v1131_v9 = vpack.c.bf16 %v93_v7, %v89_v6  ;;  %1128 = vmatprep.subr.bf16.mxu0 %v1127_v4  ;;  %v1133_v15 = vpack.c.bf16 %v92_v11, %v88_v10  ;;  %v86_v17 = vld [vmem:[#allocation4 + $0x30] sm:$0xff]  ;;  %v91_v18 = vld [vmem:[#allocation4 + $0x58] sm:$0xff]  ;;  %v269_v24 = vld [vmem:[#allocation6 + $0x8] sm:$0xff] }
  0x4f   :  { %1130 = vmatpush1.bf16.msra.mxu0 %v1129_v8  ;;  %v95_v19 = vld [vmem:[#allocation4 + $0x78] sm:$0xff]  ;;  %v1137_v20 = vpack.c.bf16 %v86_v17, %v82_v14  ;;  %v90_v22 = vld [vmem:[#allocation4 + $0x50] sm:$0xff]  ;;  %1136 = vmatprep.subr.bf16.mxu1 %v1135_v16  ;;  %v272_v25 = vld [vmem:[#allocation6 + $0x20] sm:$0xff] }
  0x50   :  { %1132 = vmatprep.subr.bf16.mxu0 %v1131_v9  ;;  %v1139_v21 = vpack.c.bf16 %v95_v19, %v91_v18  ;;  %v94_v23 = vld [vmem:[#allocation4 + $0x70] sm:$0xff]  ;;  %v268_v26 = vld [vmem:[#allocation6] sm:$0xff]  ;;  %v271_v27 = vld [vmem:[#allocation6 + $0x18] sm:$0xff]  ;;  %v1143_v29 = vpack.c.bf16 %v272_v25, %v269_v24 }
  0x51   :  { %1138 = vmatpush1.bf16.msra.mxu1 %v1137_v20  ;;  %v1141_v28 = vpack.c.bf16 %v94_v23, %v90_v22  ;;  %v275_v30 = vld [vmem:[#allocation6 + $0x38] sm:$0xff]  ;;  %v278_v31 = vld [vmem:[#allocation6 + $0x50] sm:$0xff]  ;;  %v1145_v33 = vpack.c.bf16 %v271_v27, %v268_v26  ;;  %v277_v36 = vld [vmem:[#allocation6 + $0x48] sm:$0xff] }
  0x52   :  { %v79_v32 = vld [vmem:[#allocation2] sm:$0xff]  ;;  %1140 = vmatprep.subr.bf16.mxu1 %v1139_v21  ;;  %v1147_v34 = vpack.c.bf16 %v278_v31, %v275_v30  ;;  %v274_v35 = vld [vmem:[#allocation6 + $0x30] sm:$0xff]  ;;  %v281_v37 = vld [vmem:[#allocation6 + $0x68] sm:$0xff] }
  0x53   :  { %1134 = vmatpush1.bf16.msra.mxu0 %v1133_v15  ;;  %v284_v38 = vld [vmem:[#allocation6 + $0x80] sm:$0xff]  ;;  %v1149_v39 = vpack.c.bf16 %v277_v36, %v274_v35  ;;  %v283_v42 = vld [vmem:[#allocation6 + $0x78] sm:$0xff]  ;;  %v290_v44 = vld [vmem:[#allocation6 + $0xb0] sm:$0xff] }
  0x54   :  { %1144 = vmatprep.subr.bf16.mxu0 %v1143_v29  ;;  %v1151_v40 = vpack.c.bf16 %v284_v38, %v281_v37  ;;  %v280_v41 = vld [vmem:[#allocation6 + $0x60] sm:$0xff]  ;;  %v287_v43 = vld [vmem:[#allocation6 + $0x98] sm:$0xff]  ;;  %v286_v46 = vld [vmem:[#allocation6 + $0x90] sm:$0xff] }
  0x55   :  { %1142 = vmatpush1.bf16.msra.mxu1 %v1141_v28  ;;  %v1153_v45 = vpack.c.bf16 %v283_v42, %v280_v41  ;;  %v289_v47 = vld [vmem:[#allocation6 + $0xa8] sm:$0xff]  ;;  %v1155_v48 = vpack.c.bf16 %v290_v44, %v287_v43  ;;  %v318_v50 = vld [vmem:[#allocation6 + $0x190] sm:$0xff]  ;;  %v296_v52 = vld [vmem:[#allocation6 + $0xe0] sm:$0xff] }
  0x56   :  { %967 = vmatmul.mubr.msk.f32.vlgmr.msra.gmra.mrb[0].mxu0 %vm118_vm0, %v79_v32  ;;  %v293_v49 = vld [vmem:[#allocation6 + $0xc8] sm:$0xff]  ;;  %v270_v54 = vld [vmem:[#allocation6 + $0x10] sm:$0xff]  ;;  %v324_v57 = vld [vmem:[#allocation6 + $0x1c0] sm:$0xff]  ;;  %v1157_v58 = vpack.c.bf16 %v289_v47, %v286_v46 }
  0x57   :  { %1146 = vmatpush1.bf16.msra.mxu0 %v1145_v33  ;;  %v321_v51 = vld [vmem:[#allocation6 + $0x1a8] sm:$0xff]  ;;  %v292_v59 = vld [vmem:[#allocation6 + $0xc0] sm:$0xff]  ;;  %v295_v60 = vld [vmem:[#allocation6 + $0xd8] sm:$0xff]  ;;  %v1159_v62 = vpack.c.bf16 %v296_v52, %v293_v49 }
  0x58   :  { %1148 = vmatprep.subr.bf16.mxu0 %v1147_v34  ;;  %968 = vmatmul.mubr.msk.f32.vlgmr.msra.gmra.mrb[0].mxu1 %vm118_vm0, %v79_v32  ;;  %v1271_v53 = vpack.c.bf16 %v321_v51, %v318_v50  ;;  %v273_v55 = vld [vmem:[#allocation6 + $0x28] sm:$0xff]  ;;  %v327_v61 = vld [vmem:[#allocation6 + $0x1d8] sm:$0xff]  ;;  %v276_v2 = vld [vmem:[#allocation6 + $0x40] sm:$0xff]  ;;  %v1161_v10 = vpack.c.bf16 %v295_v60, %v292_v59 }
  0x59   :  { %v1273_v56 = vpack.c.bf16 %v273_v55, %v270_v54  ;;  %v299_v63 = vld [vmem:[#allocation6 + $0xf8] sm:$0xff]  ;;  %v1275_v1 = vpack.c.bf16 %v327_v61, %v324_v57  ;;  %v302_v4 = vld [vmem:[#allocation6 + $0x110] sm:$0xff]  ;;  %v333_v7 = vld [vmem:[#allocation6 + $0x208] sm:$0xff] }
  0x5a   :  { %1272 = vmatprep.subr.bf16.mxu1 %v1271_v53  ;;  %v279_v3 = vld [vmem:[#allocation6 + $0x58] sm:$0xff]  ;;  %v330_v6 = vld [vmem:[#allocation6 + $0x1f0] sm:$0xff]  ;;  %v301_v12 = vld [vmem:[#allocation6 + $0x108] sm:$0xff]  ;;  %v1163_v14 = vpack.c.bf16 %v302_v4, %v299_v63 }
  0x5b   :  { %1150 = vmatpush1.bf16.msra.mxu0 %v1149_v39  ;;  %1274 = vmatpush3.bf16.msra.mxu1 %v1273_v56  ;;  %v1277_v5 = vpack.c.bf16 %v279_v3, %v276_v2  ;;  %v1279_v8 = vpack.c.bf16 %v333_v7, %v330_v6  ;;  %v282_v9 = vld [vmem:[#allocation6 + $0x70] sm:$0xff]  ;;  %v285_v13 = vld [vmem:[#allocation6 + $0x88] sm:$0xff]  ;;  %v336_v17 = vld [vmem:[#allocation6 + $0x220] sm:$0xff] }
  0x5c   :  { %1152 = vmatprep.subr.bf16.mxu0 %v1151_v40  ;;  %1276 = vmatprep.subr.bf16.mxu1 %v1275_v1  ;;  %v298_v11 = vld [vmem:[#allocation6 + $0xf0] sm:$0xff]  ;;  %v305_v15 = vld [vmem:[#allocation6 + $0x128] sm:$0xff]  ;;  %v1281_v16 = vpack.c.bf16 %v285_v13, %v282_v9  ;;  %v339_v18 = vld [vmem:[#allocation6 + $0x238] sm:$0xff] }
  0x5d   :  { %v308_v19 = vld [vmem:[#allocation6 + $0x140] sm:$0xff]  ;;  %v1283_v20 = vpack.c.bf16 %v339_v18, %v336_v17  ;;  %v291_v22 = vld [vmem:[#allocation6 + $0xb8] sm:$0xff]  ;;  %v342_v23 = vld [vmem:[#allocation6 + $0x250] sm:$0xff]  ;;  %v1165_v24 = vpack.c.bf16 %v301_v12, %v298_v11 }
  0x5e   :  { %v288_v21 = vld [vmem:[#allocation6 + $0xa0] sm:$0xff]  ;;  %v345_v25 = vld [vmem:[#allocation6 + $0x268] sm:$0xff]  ;;  %v1167_v26 = vpack.c.bf16 %v308_v19, %v305_v15  ;;  %v307_v28 = vld [vmem:[#allocation6 + $0x138] sm:$0xff] }
  0x5f   :  { %1154 = vmatpush1.bf16.msra.mxu0 %v1153_v45  ;;  %1278 = vmatpush3.bf16.msra.mxu1 %v1277_v5  ;;  %v304_v27 = vld [vmem:[#allocation6 + $0x120] sm:$0xff]  ;;  %v311_v29 = vld [vmem:[#allocation6 + $0x158] sm:$0xff]  ;;  %v1285_v30 = vpack.c.bf16 %v291_v22, %v288_v21  ;;  %v314_v31 = vld [vmem:[#allocation6 + $0x170] sm:$0xff]  ;;  %v1287_v32 = vpack.c.bf16 %v345_v25, %v342_v23 }
  0x60   :  { %1156 = vmatprep.subr.bf16.mxu0 %v1155_v48  ;;  %1280 = vmatprep.subr.bf16.mxu1 %v1279_v8  ;;  %v294_v33 = vld [vmem:[#allocation6 + $0xd0] sm:$0xff]  ;;  %v297_v34 = vld [vmem:[#allocation6 + $0xe8] sm:$0xff]  ;;  %v348_v35 = vld [vmem:[#allocation6 + $0x280] sm:$0xff]  ;;  %v1169_v37 = vpack.c.bf16 %v307_v28, %v304_v27  ;;  %v1171_v38 = vpack.c.bf16 %v314_v31, %v311_v29 }
  0x61   :  { %v351_v36 = vld [vmem:[#allocation6 + $0x298] sm:$0xff]  ;;  %v310_v39 = vld [vmem:[#allocation6 + $0x150] sm:$0xff]  ;;  %v313_v40 = vld [vmem:[#allocation6 + $0x168] sm:$0xff]  ;;  %v1289_v42 = vpack.c.bf16 %v297_v34, %v294_v33 }
  0x62   :  { %v317_v41 = vld [vmem:[#allocation6 + $0x188] sm:$0xff]  ;;  %v320_v43 = vld [vmem:[#allocation6 + $0x1a0] sm:$0xff]  ;;  %v1291_v44 = vpack.c.bf16 %v351_v36, %v348_v35  ;;  %v303_v46 = vld [vmem:[#allocation6 + $0x118] sm:$0xff]  ;;  %v1173_v49 = vpack.c.bf16 %v313_v40, %v310_v39 }
  0x63   :  { %1158 = vmatpush1.bf16.msra.mxu0 %v1157_v58  ;;  %1282 = vmatpush3.bf16.msra.mxu1 %v1281_v16  ;;  %v300_v45 = vld [vmem:[#allocation6 + $0x100] sm:$0xff]  ;;  %v354_v47 = vld [vmem:[#allocation6 + $0x2b0] sm:$0xff]  ;;  %v357_v48 = vld [vmem:[#allocation6 + $0x2c8] sm:$0xff]  ;;  %v1175_v50 = vpack.c.bf16 %v320_v43, %v317_v41 }
  0x64   :  { %1160 = vmatprep.subr.bf16.mxu0 %v1159_v62  ;;  %1284 = vmatprep.subr.bf16.mxu1 %v1283_v20  ;;  %v316_v51 = vld [vmem:[#allocation6 + $0x180] sm:$0xff]  ;;  %v319_v52 = vld [vmem:[#allocation6 + $0x198] sm:$0xff]  ;;  %v1293_v54 = vpack.c.bf16 %v303_v46, %v300_v45  ;;  %v326_v55 = vld [vmem:[#allocation6 + $0x1d0] sm:$0xff]  ;;  %v1295_v56 = vpack.c.bf16 %v357_v48, %v354_v47 }
  0x65   :  { %v323_v53 = vld [vmem:[#allocation6 + $0x1b8] sm:$0xff]  ;;  %v306_v57 = vld [vmem:[#allocation6 + $0x130] sm:$0xff]  ;;  %v309_v58 = vld [vmem:[#allocation6 + $0x148] sm:$0xff]  ;;  %v1177_v59 = vpack.c.bf16 %v319_v52, %v316_v51 }
  0x66   :  { %v1179_v60 = vpack.c.bf16 %v326_v55, %v323_v53  ;;  %v322_v61 = vld [vmem:[#allocation6 + $0x1b0] sm:$0xff]  ;;  %v325_v62 = vld [vmem:[#allocation6 + $0x1c8] sm:$0xff]  ;;  %v1297_v63 = vpack.c.bf16 %v309_v58, %v306_v57  ;;  %v332_v2 = vld [vmem:[#allocation6 + $0x200] sm:$0xff] }
  0x67   :  { %1162 = vmatpush1.bf16.msra.mxu0 %v1161_v10  ;;  %1286 = vmatpush3.bf16.msra.mxu1 %v1285_v30  ;;  %v329_v1 = vld [vmem:[#allocation6 + $0x1e8] sm:$0xff]  ;;  %v1181_v3 = vpack.c.bf16 %v325_v62, %v322_v61  ;;  %v328_v5 = vld [vmem:[#allocation6 + $0x1e0] sm:$0xff]  ;;  %v331_v6 = vld [vmem:[#allocation6 + $0x1f8] sm:$0xff] }
  0x68   :  { %1164 = vmatprep.subr.bf16.mxu0 %v1163_v14  ;;  %1288 = vmatprep.subr.bf16.mxu1 %v1287_v32  ;;  %v1183_v4 = vpack.c.bf16 %v332_v2, %v329_v1  ;;  %v335_v7 = vld [vmem:[#allocation6 + $0x218] sm:$0xff]  ;;  %v338_v8 = vld [vmem:[#allocation6 + $0x230] sm:$0xff]  ;;  %v1185_v9 = vpack.c.bf16 %v331_v6, %v328_v5  ;;  %v337_v12 = vld [vmem:[#allocation6 + $0x228] sm:$0xff] }
  0x69   :  { %v1187_v10 = vpack.c.bf16 %v338_v8, %v335_v7  ;;  %v334_v11 = vld [vmem:[#allocation6 + $0x210] sm:$0xff]  ;;  %v341_v13 = vld [vmem:[#allocation6 + $0x248] sm:$0xff]  ;;  %v344_v14 = vld [vmem:[#allocation6 + $0x260] sm:$0xff] }
  0x6a   :  { %v1189_v15 = vpack.c.bf16 %v337_v12, %v334_v11  ;;  %v1191_v16 = vpack.c.bf16 %v344_v14, %v341_v13  ;;  %v340_v17 = vld [vmem:[#allocation6 + $0x240] sm:$0xff]  ;;  %v343_v18 = vld [vmem:[#allocation6 + $0x258] sm:$0xff]  ;;  %v350_v20 = vld [vmem:[#allocation6 + $0x290] sm:$0xff] }
  0x6b   :  { %1166 = vmatpush1.bf16.msra.mxu0 %v1165_v24  ;;  %1290 = vmatpush3.bf16.msra.mxu1 %v1289_v42  ;;  %v347_v19 = vld [vmem:[#allocation6 + $0x278] sm:$0xff]  ;;  %v1193_v21 = vpack.c.bf16 %v343_v18, %v340_v17  ;;  %v346_v23 = vld [vmem:[#allocation6 + $0x270] sm:$0xff]  ;;  %v349_v24 = vld [vmem:[#allocation6 + $0x288] sm:$0xff] }
  0x6c   :  { %1168 = vmatprep.subr.bf16.mxu0 %v1167_v26  ;;  %1292 = vmatprep.subr.bf16.mxu1 %v1291_v44  ;;  %v1195_v22 = vpack.c.bf16 %v350_v20, %v347_v19  ;;  %v353_v25 = vld [vmem:[#allocation6 + $0x2a8] sm:$0xff]  ;;  %v356_v26 = vld [vmem:[#allocation6 + $0x2c0] sm:$0xff]  ;;  %v1197_v27 = vpack.c.bf16 %v349_v24, %v346_v23  ;;  %v355_v30 = vld [vmem:[#allocation6 + $0x2b8] sm:$0xff] }
  0x6d   :  { %v1199_v28 = vpack.c.bf16 %v356_v26, %v353_v25  ;;  %v352_v29 = vld [vmem:[#allocation6 + $0x2a0] sm:$0xff]  ;;  %v359_v32 = vld [vmem:[#allocation6 + $0x2d8] sm:$0xff]  ;;  %v362_v33 = vld [vmem:[#allocation6 + $0x2f0] sm:$0xff] }
  0x6e   :  { %v1201_v31 = vpack.c.bf16 %v355_v30, %v352_v29  ;;  %v360_v34 = vld [vmem:[#allocation6 + $0x2e0] sm:$0xff]  ;;  %v1203_v35 = vpack.c.bf16 %v362_v33, %v359_v32  ;;  %v363_v36 = vld [vmem:[#allocation6 + $0x2f8] sm:$0xff]  ;;  %v365_v44 = vld [vmem:[#allocation6 + $0x308] sm:$0xff] }
  0x6f   :  { %1170 = vmatpush1.bf16.msra.mxu0 %v1169_v37  ;;  %1294 = vmatpush3.bf16.msra.mxu1 %v1293_v54  ;;  %v358_v37 = vld [vmem:[#allocation6 + $0x2d0] sm:$0xff]  ;;  %v1299_v39 = vpack.c.bf16 %v363_v36, %v360_v34  ;;  %v312_v41 = vld [vmem:[#allocation6 + $0x160] sm:$0xff]  ;;  %v315_v42 = vld [vmem:[#allocation6 + $0x178] sm:$0xff] }
  0x70   :  { %1172 = vmatprep.subr.bf16.mxu0 %v1171_v38  ;;  %1296 = vmatprep.subr.bf16.mxu1 %v1295_v56  ;;  %v361_v38 = vld [vmem:[#allocation6 + $0x2e8] sm:$0xff]  ;;  %v1301_v43 = vpack.c.bf16 %v315_v42, %v312_v41  ;;  %v368_v45 = vld [vmem:[#allocation6 + $0x320] sm:$0xff]  ;;  %v414_v46 = vld [vmem:[#allocation6 + $0x490] sm:$0xff] }
  0x71   :  { %v1205_v40 = vpack.c.bf16 %v361_v38, %v358_v37  ;;  %v1207_v47 = vpack.c.bf16 %v368_v45, %v365_v44  ;;  %v417_v48 = vld [vmem:[#allocation6 + $0x4a8] sm:$0xff]  ;;  %v1615_v53 = vld [vmem:[%s1654_s2] sm:$0xf]  ;;  %v374_v5 = vld [vmem:[#allocation6 + $0x350] sm:$0xff] }
  0x72   :  { %v369_v1 = vld [vmem:[#allocation6 + $0x328] sm:$0xff]  ;;  %v371_v2 = vld [vmem:[#allocation6 + $0x338] sm:$0xff]  ;;  %v420_v6 = vld [vmem:[#allocation6 + $0x4c0] sm:$0xff] }
  0x73   :  { %1174 = vmatpush1.bf16.msra.mxu0 %v1173_v49  ;;  %1298 = vmatpush3.bf16.msra.mxu1 %v1297_v63  ;;  %v1303_v49 = vpack.c.bf16 %v417_v48, %v414_v46  ;;  %v366_v63 = vld [vmem:[#allocation6 + $0x310] sm:$0xff]  ;;  %v423_v7 = vld [vmem:[#allocation6 + $0x4d8] sm:$0xff]  ;;  %v373_v13 = vld [vmem:[#allocation6 + $0x348] sm:$0xff] }
  0x74   :  { %1176 = vmatprep.subr.bf16.mxu0 %v1175_v50  ;;  %1300 = vmatprep.subr.bf16.mxu1 %v1299_v39  ;;  %v98_v50 = vlaneseq  ;;  %v1305_v11 = vpack.c.bf16 %v369_v1, %v366_v63  ;;  %v370_v12 = vld [vmem:[#allocation6 + $0x330] sm:$0xff]  ;;  %v1307_v17 = vpack.c.bf16 %v423_v7, %v420_v6  ;;  %v372_v18 = vld [vmem:[#allocation6 + $0x340] sm:$0xff]  ;;  %v375_v19 = vld [vmem:[#allocation6 + $0x358] sm:$0xff] }
  0x75   :  { %v377_v20 = vld [vmem:[#allocation6 + $0x368] sm:$0xff]  ;;  %v426_v23 = vld [vmem:[#allocation6 + $0x4f0] sm:$0xff]  ;;  %v1213_v26 = vpack.c.bf16 %v373_v13, %v370_v12  ;;  %v379_v29 = vld [vmem:[#allocation6 + $0x378] sm:$0xff] }
  0x76   :  { %v1609_v51 = vshrl.u32 %v98_v50, 7  ;;  %v429_v24 = vld [vmem:[#allocation6 + $0x508] sm:$0xff]  ;;  %v378_v32 = vld [vmem:[#allocation6 + $0x370] sm:$0xff]  ;;  %v383_v34 = vld [vmem:[#allocation6 + $0x398] sm:$0xff] }
  0x77   :  { %1178 = vmatpush1.bf16.msra.mxu0 %v1177_v59  ;;  %1302 = vmatpush3.bf16.msra.mxu1 %v1301_v43  ;;  %v364_v59 = vld [vmem:[#allocation6 + $0x300] sm:$0xff]  ;;  %v381_v33 = vld [vmem:[#allocation6 + $0x388] sm:$0xff]  ;;  %v435_v37 = vld [vmem:[#allocation6 + $0x538] sm:$0xff] }
  0x78   :  { %1180 = vmatprep.subr.bf16.mxu0 %v1179_v60  ;;  %1304 = vmatprep.subr.bf16.mxu1 %v1303_v49  ;;  %v100_v52 = vsub.s32 0, %v1609_v51  ;;  %v104_v54 = vsub.s32 1, %v1609_v51  ;;  %v112_v56 = vsub.s32 3, %v1609_v51  ;;  %v367_v60 = vld [vmem:[#allocation6 + $0x318] sm:$0xff]  ;;  %v432_v36 = vld [vmem:[#allocation6 + $0x520] sm:$0xff]  ;;  %v1313_v39 = vpack.c.bf16 %v381_v33, %v378_v32  ;;  %v385_v41 = vld [vmem:[#allocation6 + $0x3a8] sm:$0xff] }
  0x79   :  { %v1315_v43 = vpack.c.bf16 %v435_v37, %v432_v36  ;;  %v384_v44 = vld [vmem:[#allocation6 + $0x3a0] sm:$0xff]  ;;  %v387_v45 = vld [vmem:[#allocation6 + $0x3b8] sm:$0xff]  ;;  %v389_v46 = vld [vmem:[#allocation6 + $0x3c8] sm:$0xff] }
  0x7a   :  { %v101_v55 = vrot.slane %v1615_v53, %v100_v52  ;;  %v105_v57 = vrot.slane %v1615_v53, %v104_v54  ;;  %v438_v48 = vld [vmem:[#allocation6 + $0x550] sm:$0xff]  ;;  %v441_v49 = vld [vmem:[#allocation6 + $0x568] sm:$0xff]  ;;  %v444_v1 = vld [vmem:[#allocation6 + $0x580] sm:$0xff] }
  0x7b   :  { %1182 = vmatpush1.bf16.msra.mxu0 %v1181_v3  ;;  %v113_v3 = vrot.slane %v1615_v53, %v112_v56  ;;  %v388_v56 = vld [vmem:[#allocation6 + $0x3c0] sm:$0xff]  ;;  %v398_v63 = vld [vmem:[#allocation6 + $0x410] sm:$0xff]  ;;  %v397_v6 = vld [vmem:[#allocation6 + $0x408] sm:$0xff] }
  0x7c   :  { %1184 = vmatprep.subr.bf16.mxu0 %v1183_v4  ;;  %v401_v12 = vld [vmem:[#allocation6 + $0x428] sm:$0xff]  ;;  %v404_v13 = vld [vmem:[#allocation6 + $0x440] sm:$0xff]  ;;  %v406_v32 = vld [vmem:[#allocation6 + $0x450] sm:$0xff] }
  0x7d   :  { %v408_v36 = vld [vmem:[#allocation6 + $0x460] sm:$0xff]  ;;  %v411_v37 = vld [vmem:[#allocation6 + $0x478] sm:$0xff] }
  0x7f   :  { %1186 = vmatpush1.bf16.msra.mxu0 %v1185_v9 }
  0x80   :  { %1188 = vmatprep.subr.bf16.mxu0 %v1187_v10  ;;  %v1209_v10 = vpack.c.bf16 %v367_v60, %v364_v59  ;;  %v1319_v59 = vpack.c.bf16 %v441_v49, %v438_v48  ;;  %v390_v60 = vld [vmem:[#allocation6 + $0x3d0] sm:$0xff] }
  0x83   :  { %1190 = vmatpush1.bf16.msra.mxu0 %v1189_v15 }
  0x84   :  { %1192 = vmatprep.subr.bf16.mxu0 %v1191_v16  ;;  %v1211_v16 = vpack.c.bf16 %v374_v5, %v371_v2  ;;  %v447_v2 = vld [vmem:[#allocation6 + $0x598] sm:$0xff]  ;;  %v394_v5 = vld [vmem:[#allocation6 + $0x3f0] sm:$0xff] }
  0x87   :  { %1194 = vmatpush1.bf16.msra.mxu0 %v1193_v21 }
  0x88   :  { %1196 = vmatprep.subr.bf16.mxu0 %v1195_v22  ;;  %v380_v22 = vld [vmem:[#allocation6 + $0x380] sm:$0xff] }
  0x89   :  { %v1215_v30 = vpack.c.bf16 %v380_v22, %v377_v20  ;;  %v403_v20 = vld [vmem:[#allocation6 + $0x438] sm:$0xff] }
  0x8b   :  { %1198 = vmatpush1.bf16.msra.mxu0 %v1197_v27  ;;  %v1309_v27 = vpack.c.bf16 %v375_v19, %v372_v18  ;;  %v400_v19 = vld [vmem:[#allocation6 + $0x420] sm:$0xff] }
  0x8c   :  { %1200 = vmatprep.subr.bf16.mxu0 %v1199_v28  ;;  %v376_v28 = vld [vmem:[#allocation6 + $0x360] sm:$0xff] }
  0x8d   :  { %v1217_v38 = vpack.c.bf16 %v379_v29, %v376_v28  ;;  %v459_v28 = vld [vmem:[#allocation6 + $0x5f8] sm:$0xff] }
  0x8f   :  { %1202 = vmatpush1.bf16.msra.mxu0 %v1201_v31  ;;  %v1311_v31 = vpack.c.bf16 %v429_v24, %v426_v23  ;;  %v402_v23 = vld [vmem:[#allocation6 + $0x430] sm:$0xff]  ;;  %v405_v24 = vld [vmem:[#allocation6 + $0x448] sm:$0xff] }
  0x90   :  { %1204 = vmatprep.subr.bf16.mxu0 %v1203_v35  ;;  %v386_v35 = vld [vmem:[#allocation6 + $0x3b0] sm:$0xff] }
  0x91   :  { %v1219_v42 = vpack.c.bf16 %v386_v35, %v383_v34  ;;  %v409_v35 = vld [vmem:[#allocation6 + $0x468] sm:$0xff] }
  0x93   :  { %1206 = vmatpush1.bf16.msra.mxu0 %v1205_v40  ;;  %v382_v40 = vld [vmem:[#allocation6 + $0x390] sm:$0xff] }
  0x94   :  { %1208 = vmatprep.subr.bf16.mxu0 %v1207_v47  ;;  %v392_v47 = vld [vmem:[#allocation6 + $0x3e0] sm:$0xff]  ;;  %v1221_v50 = vpack.c.bf16 %v385_v41, %v382_v40  ;;  %v1333_v41 = vpack.c.bf16 %v411_v37, %v408_v36  ;;  %v780_v37 = vld [vmem:[#allocation7 + $0x90] sm:$0xff] }
 0x129   :  { %v188_v58 = vpop.f32.mrb[0].mxu0 }
 0x12a   :  { %v189_v61 = vadd.f32 %v188_v58, %v101_v55  ;;  %v190_v62 = vpop.f32.mrb[1].mxu0  ;;  %v1317_v55 = vpack.c.bf16 %v387_v45, %v384_v44  ;;  %v1223_v58 = vpack.c.bf16 %v392_v47, %v389_v46  ;;  %v415_v44 = vld [vmem:[#allocation6 + $0x498] sm:$0xff]  ;;  %v422_v46 = vld [vmem:[#allocation6 + $0x4d0] sm:$0xff] }
 0x12b   :  { %v191_v4 = vadd.f32 %v190_v62, %v105_v57  ;;  %v1626_v8 = vpop.f32.mrb[0].mxu1  ;;  %v391_v57 = vld [vmem:[#allocation6 + $0x3d8] sm:$0xff] }
 0x12c   :  { %v261_v14 = vpop.f32.mrb[1].mxu1  ;;  %v264_v15 = vmax.f32 %v189_v61, 0.0  ;;  %v393_v61 = vld [vmem:[#allocation6 + $0x3e8] sm:$0xff]  ;;  %v395_v62 = vld [vmem:[#allocation6 + $0x3f8] sm:$0xff] }
 0x12d   :  { %v265_v9 = vmax.f32 %v191_v4, 0.0  ;;  %v262_v21 = vadd.f32 %v261_v14, %v113_v3  ;;  %v1225_v3 = vpack.c.bf16 %v391_v57, %v388_v56  ;;  %v1321_v4 = vpack.c.bf16 %v393_v61, %v390_v60  ;;  %v450_v14 = vld [vmem:[#allocation6 + $0x5b0] sm:$0xff]  ;;  %v419_v45 = vld [vmem:[#allocation6 + $0x4b8] sm:$0xff]  ;;  %v428_v56 = vld [vmem:[#allocation6 + $0x500] sm:$0xff] }
 0x12e   :  { %v1227_v7 = vpack.c.bf16 %v398_v63, %v395_v62  ;;  %v1243_v49 = vpack.c.bf16 %v422_v46, %v419_v45  ;;  %v427_v60 = vld [vmem:[#allocation6 + $0x4f8] sm:$0xff]  ;;  %v434_v62 = vld [vmem:[#allocation6 + $0x530] sm:$0xff]  ;;  %v766_v45 = vld [vmem:[#allocation7 + $0x20] sm:$0xff] }
 0x12f   :  { %541 = vmatprep.mubr.f32.mxu0 %v265_v9  ;;  %683 = vmatprep.mubr.f32.mxu1 %v265_v9  ;;  %v267_v25 = vmax.f32 %v262_v21, 0.0  ;;  %v1323_v9 = vpack.c.bf16 %v447_v2, %v444_v1  ;;  %v1231_v21 = vpack.c.bf16 %v404_v13, %v401_v12  ;;  %v431_v61 = vld [vmem:[#allocation6 + $0x518] sm:$0xff]  ;;  %v430_v2 = vld [vmem:[#allocation6 + $0x510] sm:$0xff]  ;;  %v767_v46 = vld [vmem:[#allocation7 + $0x28] sm:$0xff] }
 0x130   :  { %542 = vmatmul.mubr.f32.vlgmr.msra.gmra.mrb[2].mxu0 %v264_v15  ;;  %684 = vmatmul.mubr.f32.vlgmr.msra.gmra.mrb[2].mxu1 %v264_v15  ;;  %v453_v15 = vld [vmem:[#allocation6 + $0x5c8] sm:$0xff]  ;;  %v1251_v1 = vpack.c.bf16 %v434_v62, %v431_v61  ;;  %v446_v12 = vld [vmem:[#allocation6 + $0x590] sm:$0xff] }
 0x131   :  { %1210 = vmatpush1.bf16.msra.mxu0 %v1209_v10  ;;  %1306 = vmatpush3.bf16.msra.mxu1 %v1305_v11  ;;  %v396_v10 = vld [vmem:[#allocation6 + $0x400] sm:$0xff]  ;;  %v399_v11 = vld [vmem:[#allocation6 + $0x418] sm:$0xff]  ;;  %v1327_v22 = vpack.c.bf16 %v453_v15, %v450_v14  ;;  %v442_v15 = vld [vmem:[#allocation6 + $0x570] sm:$0xff] }
 0x132   :  { %1212 = vmatprep.subr.bf16.mxu0 %v1211_v16  ;;  %1308 = vmatprep.subr.bf16.mxu1 %v1307_v17  ;;  %v108_v16 = vsub.s32 2, %v1609_v51  ;;  %v1229_v17 = vpack.c.bf16 %v397_v6, %v394_v5  ;;  %v1325_v18 = vpack.c.bf16 %v399_v11, %v396_v10  ;;  %v440_v5 = vld [vmem:[#allocation6 + $0x560] sm:$0xff]  ;;  %v439_v10 = vld [vmem:[#allocation6 + $0x558] sm:$0xff]  ;;  %v771_v61 = vld [vmem:[#allocation7 + $0x48] sm:$0xff] }
 0x133   :  { %753 = vmatprep.mubr.f32.mxu1 %v267_v25  ;;  %612 = vmatprep.mubr.f32.mxu0 %v267_v25  ;;  %v407_v25 = vld [vmem:[#allocation6 + $0x458] sm:$0xff]  ;;  %v788_v62 = vld [vmem:[#allocation7 + $0xd0] sm:$0xff]  ;;  %v798_v51 = vld [vmem:[#allocation7 + $0x120] sm:$0xff] }
 0x134   :  { %v109_v29 = vrot.slane %v1615_v53, %v108_v16  ;;  %v1237_v53 = vpack.c.bf16 %v409_v35, %v406_v32  ;;  %v443_v11 = vld [vmem:[#allocation6 + $0x578] sm:$0xff]  ;;  %v779_v32 = vld [vmem:[#allocation7 + $0x88] sm:$0xff] }
 0x135   :  { %1214 = vmatpush1.bf16.msra.mxu0 %v1213_v26  ;;  %1310 = vmatpush3.bf16.msra.mxu1 %v1309_v27  ;;  %v410_v26 = vld [vmem:[#allocation6 + $0x470] sm:$0xff]  ;;  %v456_v27 = vld [vmem:[#allocation6 + $0x5e0] sm:$0xff]  ;;  %v1259_v14 = vpack.c.bf16 %v446_v12, %v443_v11  ;;  %v763_v35 = vld [vmem:[#allocation7 + $0x8] sm:$0xff] }
 0x136   :  { %1216 = vmatprep.subr.bf16.mxu0 %v1215_v30  ;;  %1312 = vmatprep.subr.bf16.mxu1 %v1311_v31  ;;  %v1233_v30 = vpack.c.bf16 %v403_v20, %v400_v19  ;;  %v1329_v31 = vpack.c.bf16 %v405_v24, %v402_v23  ;;  %v1235_v33 = vpack.c.bf16 %v410_v26, %v407_v25  ;;  %v452_v19 = vld [vmem:[#allocation6 + $0x5c0] sm:$0xff]  ;;  %v451_v23 = vld [vmem:[#allocation6 + $0x5b8] sm:$0xff]  ;;  %v458_v25 = vld [vmem:[#allocation6 + $0x5f0] sm:$0xff] }
 0x137   :  { %v1331_v34 = vpack.c.bf16 %v459_v28, %v456_v27  ;;  %v1633_v40 = vadd.f32 %v1626_v8, %v109_v29  ;;  %v418_v8 = vld [vmem:[#allocation6 + $0x4b0] sm:$0xff]  ;;  %v455_v24 = vld [vmem:[#allocation6 + $0x5d8] sm:$0xff]  ;;  %v457_v29 = vld [vmem:[#allocation6 + $0x5e8] sm:$0xff] }
 0x138   :  { %v1267_v27 = vpack.c.bf16 %v458_v25, %v455_v24  ;;  %v454_v28 = vld [vmem:[#allocation6 + $0x5d0] sm:$0xff]  ;;  %v775_v11 = vld [vmem:[#allocation7 + $0x68] sm:$0xff]  ;;  %v460_v24 = vld [vmem:[%s1656_s4] sm:$0x7] }
 0x139   :  { %1218 = vmatpush1.bf16.msra.mxu0 %v1217_v38  ;;  %1314 = vmatpush3.bf16.msra.mxu1 %v1313_v39  ;;  %v413_v38 = vld [vmem:[#allocation6 + $0x488] sm:$0xff]  ;;  %v416_v39 = vld [vmem:[#allocation6 + $0x4a0] sm:$0xff]  ;;  %v266_v47 = vmax.f32 %v1633_v40, 0.0  ;;  %v473_v25 = vrot.slane %v460_v24, %v108_v16 }
 0x13a   :  { %1220 = vmatprep.subr.bf16.mxu0 %v1219_v42  ;;  %1316 = vmatprep.subr.bf16.mxu1 %v1315_v43  ;;  %v1239_v42 = vpack.c.bf16 %v416_v39, %v413_v38  ;;  %v412_v43 = vld [vmem:[#allocation6 + $0x480] sm:$0xff]  ;;  %v781_v38 = vld [vmem:[#allocation7 + $0x98] sm:$0xff]  ;;  %v764_v39 = vld [vmem:[#allocation7 + $0x10] sm:$0xff] }
 0x13b   :  { %v1241_v48 = vpack.c.bf16 %v415_v44, %v412_v43  ;;  %v1339_v40 = vpack.c.bf16 %v781_v38, %v780_v37  ;;  %v795_v37 = vld [vmem:[#allocation7 + $0x108] sm:$0xff] }
 0x13d   :  { %1222 = vmatpush1.bf16.msra.mxu0 %v1221_v50  ;;  %1318 = vmatpush3.bf16.msra.mxu1 %v1317_v55  ;;  %v421_v50 = vld [vmem:[#allocation6 + $0x4c8] sm:$0xff] }
 0x13e   :  { %1224 = vmatprep.subr.bf16.mxu0 %v1223_v58  ;;  %1320 = vmatprep.subr.bf16.mxu1 %v1319_v59  ;;  %v425_v55 = vld [vmem:[#allocation6 + $0x4e8] sm:$0xff]  ;;  %v1245_v57 = vpack.c.bf16 %v421_v50, %v418_v8  ;;  %v424_v59 = vld [vmem:[#allocation6 + $0x4e0] sm:$0xff]  ;;  %v768_v50 = vld [vmem:[#allocation7 + $0x30] sm:$0xff] }
 0x13f   :  { %v1247_v58 = vpack.c.bf16 %v428_v56, %v425_v55  ;;  %v1249_v63 = vpack.c.bf16 %v427_v60, %v424_v59  ;;  %v769_v55 = vld [vmem:[#allocation7 + $0x38] sm:$0xff]  ;;  %v786_v56 = vld [vmem:[#allocation7 + $0xc0] sm:$0xff] }
 0x140   :  { %v770_v60 = vld [vmem:[#allocation7 + $0x40] sm:$0xff] }
 0x141   :  { %1226 = vmatpush1.bf16.msra.mxu0 %v1225_v3  ;;  %1322 = vmatpush3.bf16.msra.mxu1 %v1321_v4  ;;  %v433_v3 = vld [vmem:[#allocation6 + $0x528] sm:$0xff] }
 0x142   :  { %1228 = vmatprep.subr.bf16.mxu0 %v1227_v7  ;;  %1324 = vmatprep.subr.bf16.mxu1 %v1323_v9  ;;  %v437_v4 = vld [vmem:[#allocation6 + $0x548] sm:$0xff]  ;;  %v1253_v6 = vpack.c.bf16 %v433_v3, %v430_v2  ;;  %v436_v9 = vld [vmem:[#allocation6 + $0x540] sm:$0xff]  ;;  %v772_v3 = vld [vmem:[#allocation7 + $0x50] sm:$0xff] }
 0x143   :  { %v1255_v7 = vpack.c.bf16 %v440_v5, %v437_v4  ;;  %v1257_v13 = vpack.c.bf16 %v439_v10, %v436_v9  ;;  %v773_v4 = vld [vmem:[#allocation7 + $0x58] sm:$0xff]  ;;  %v790_v5 = vld [vmem:[#allocation7 + $0xe0] sm:$0xff] }
 0x144   :  { %v774_v10 = vld [vmem:[#allocation7 + $0x60] sm:$0xff] }
 0x145   :  { %1230 = vmatpush1.bf16.msra.mxu0 %v1229_v17  ;;  %1326 = vmatpush3.bf16.msra.mxu1 %v1325_v18  ;;  %v445_v17 = vld [vmem:[#allocation6 + $0x588] sm:$0xff]  ;;  %v1361_v12 = vpack.c.bf16 %v775_v11, %v774_v10 }
 0x146   :  { %1232 = vmatprep.subr.bf16.mxu0 %v1231_v21  ;;  %1328 = vmatprep.subr.bf16.mxu1 %v1327_v22  ;;  %v449_v18 = vld [vmem:[#allocation6 + $0x5a8] sm:$0xff]  ;;  %v1261_v20 = vpack.c.bf16 %v445_v17, %v442_v15  ;;  %v448_v22 = vld [vmem:[#allocation6 + $0x5a0] sm:$0xff]  ;;  %v776_v17 = vld [vmem:[#allocation7 + $0x70] sm:$0xff] }
 0x147   :  { %v1263_v21 = vpack.c.bf16 %v452_v19, %v449_v18  ;;  %v1265_v26 = vpack.c.bf16 %v451_v23, %v448_v22  ;;  %v777_v18 = vld [vmem:[#allocation7 + $0x78] sm:$0xff] }
 0x148   :  { %v1365_v19 = vpack.c.bf16 %v777_v18, %v776_v17 }
 0x149   :  { %1234 = vmatpush1.bf16.msra.mxu0 %v1233_v30  ;;  %1330 = vmatpush3.bf16.msra.mxu1 %v1329_v31  ;;  %v1269_v30 = vpack.c.bf16 %v457_v29, %v454_v28  ;;  %v778_v31 = vld [vmem:[#allocation7 + $0x80] sm:$0xff] }
 0x14a   :  { %1236 = vmatprep.subr.bf16.mxu0 %v1235_v33  ;;  %1332 = vmatprep.subr.bf16.mxu1 %v1331_v34  ;;  %v1335_v33 = vpack.c.bf16 %v779_v32, %v778_v31  ;;  %v762_v34 = vld [vmem:[#allocation7] sm:$0xff]  ;;  %v465_v31 = vrot.slane %v460_v24, %v100_v52  ;;  %v469_v32 = vrot.slane %v460_v24, %v104_v54  ;;  %v799_v52 = vld [vmem:[#allocation7 + $0x128] sm:$0xff] }
 0x14b   :  { %v1337_v36 = vpack.c.bf16 %v763_v35, %v762_v34  ;;  %v1374_v54 = vpack.c.bf16 %v799_v52, %v798_v51 }
 0x14d   :  { %1238 = vmatpush1.bf16.msra.mxu0 %v1237_v53  ;;  %1334 = vmatpush3.bf16.msra.mxu1 %v1333_v41  ;;  %v765_v53 = vld [vmem:[#allocation7 + $0x18] sm:$0xff]  ;;  %v782_v41 = vld [vmem:[#allocation7 + $0xa0] sm:$0xff] }
 0x14e   :  { %1240 = vmatprep.subr.bf16.mxu0 %v1239_v42  ;;  %1336 = vmatprep.subr.bf16.mxu1 %v1335_v33  ;;  %v783_v42 = vld [vmem:[#allocation7 + $0xa8] sm:$0xff]  ;;  %v1341_v43 = vpack.c.bf16 %v765_v53, %v764_v39  ;;  %v796_v53 = vld [vmem:[#allocation7 + $0x110] sm:$0xff] }
 0x14f   :  { %v1343_v44 = vpack.c.bf16 %v783_v42, %v782_v41  ;;  %v797_v41 = vld [vmem:[#allocation7 + $0x118] sm:$0xff] }
 0x150   :  { %754 = vmatmul.mubr.f32.vlgmr.msra.gmra.mrb[4].mxu1 %v266_v47  ;;  %v1371_v42 = vpack.c.bf16 %v797_v41, %v796_v53 }
 0x151   :  { %1242 = vmatpush1.bf16.msra.mxu0 %v1241_v48  ;;  %1338 = vmatpush3.bf16.msra.mxu1 %v1337_v36  ;;  %v785_v48 = vld [vmem:[#allocation7 + $0xb8] sm:$0xff]  ;;  %v794_v36 = vld [vmem:[#allocation7 + $0x100] sm:$0xff] }
 0x152   :  { %1244 = vmatprep.subr.bf16.mxu0 %v1243_v49  ;;  %1340 = vmatprep.subr.bf16.mxu1 %v1339_v40  ;;  %v1345_v49 = vpack.c.bf16 %v767_v46, %v766_v45  ;;  %v1368_v40 = vpack.c.bf16 %v795_v37, %v794_v36  ;;  %v802_v46 = vld [vmem:[#allocation7 + $0x140] sm:$0xff] }
 0x155   :  { %1246 = vmatpush1.bf16.msra.mxu0 %v1245_v57  ;;  %1342 = vmatpush3.bf16.msra.mxu1 %v1341_v43  ;;  %v787_v57 = vld [vmem:[#allocation7 + $0xc8] sm:$0xff]  ;;  %v800_v43 = vld [vmem:[#allocation7 + $0x130] sm:$0xff] }
 0x156   :  { %1248 = vmatprep.subr.bf16.mxu0 %v1247_v58  ;;  %1344 = vmatprep.subr.bf16.mxu1 %v1343_v44  ;;  %v1349_v58 = vpack.c.bf16 %v769_v55, %v768_v50  ;;  %v1351_v59 = vpack.c.bf16 %v787_v57, %v786_v56  ;;  %v801_v44 = vld [vmem:[#allocation7 + $0x138] sm:$0xff]  ;;  %v806_v50 = vld [vmem:[#allocation7 + $0x160] sm:$0xff]  ;;  %v807_v55 = vld [vmem:[#allocation7 + $0x168] sm:$0xff] }
 0x157   :  { %v1377_v45 = vpack.c.bf16 %v801_v44, %v800_v43  ;;  %v1386_v56 = vpack.c.bf16 %v807_v55, %v806_v50  ;;  %v808_v57 = vld [vmem:[#allocation7 + $0x170] sm:$0xff] }
 0x159   :  { %1250 = vmatpush1.bf16.msra.mxu0 %v1249_v63  ;;  %1346 = vmatpush3.bf16.msra.mxu1 %v1345_v49  ;;  %v789_v63 = vld [vmem:[#allocation7 + $0xd8] sm:$0xff]  ;;  %v804_v49 = vld [vmem:[#allocation7 + $0x150] sm:$0xff] }
 0x15a   :  { %1252 = vmatprep.subr.bf16.mxu0 %v1251_v1  ;;  %v1353_v1 = vpack.c.bf16 %v771_v61, %v770_v60  ;;  %v1355_v2 = vpack.c.bf16 %v789_v63, %v788_v62 }
 0x15d   :  { %1254 = vmatpush1.bf16.msra.mxu0 %v1253_v6  ;;  %v791_v6 = vld [vmem:[#allocation7 + $0xe8] sm:$0xff] }
 0x15e   :  { %1256 = vmatprep.subr.bf16.mxu0 %v1255_v7  ;;  %v1357_v7 = vpack.c.bf16 %v773_v4, %v772_v3  ;;  %v1359_v9 = vpack.c.bf16 %v791_v6, %v790_v5 }
 0x161   :  { %1258 = vmatpush1.bf16.msra.mxu0 %v1257_v13  ;;  %v792_v13 = vld [vmem:[#allocation7 + $0xf0] sm:$0xff] }
 0x162   :  { %1260 = vmatprep.subr.bf16.mxu0 %v1259_v14  ;;  %v793_v14 = vld [vmem:[#allocation7 + $0xf8] sm:$0xff] }
 0x163   :  { %v1363_v15 = vpack.c.bf16 %v793_v14, %v792_v13 }
 0x165   :  { %1262 = vmatpush1.bf16.msra.mxu0 %v1261_v20  ;;  %v1515_v20 = vmov 0.0|0.0  }
 0x166   :  { %1264 = vmatprep.subr.bf16.mxu0 %v1263_v21 }
 0x169   :  { %1266 = vmatpush1.bf16.msra.mxu0 %v1265_v26 }
 0x16a   :  { %1268 = vmatprep.subr.bf16.mxu0 %v1267_v27 }
 0x16d   :  { %1270 = vmatpush1.bf16.msra.mxu0 %v1269_v30 }
 0x170   :  { %613 = vmatmul.mubr.f32.vlgmr.msra.gmra.mrb[2].mxu0 %v266_v47  ;;  %v784_v47 = vld [vmem:[#allocation7 + $0xb0] sm:$0xff] }
 0x171   :  { %v1347_v8 = vpack.c.bf16 %v785_v48, %v784_v47  ;;  %v803_v47 = vld [vmem:[#allocation7 + $0x148] sm:$0xff] }
 0x172   :  { %v1380_v48 = vpack.c.bf16 %v803_v47, %v802_v46 }
 0x173   :  { %1348 = vmatprep.subr.bf16.mxu1 %v1347_v8  ;;  %v805_v8 = vld [vmem:[#allocation7 + $0x158] sm:$0xff] }
 0x174   :  { %1350 = vmatpush3.bf16.msra.mxu1 %v1349_v58  ;;  %v809_v58 = vld [vmem:[#allocation7 + $0x178] sm:$0xff] }
 0x175   :  { %1352 = vmatprep.subr.bf16.mxu1 %v1351_v59  ;;  %v1389_v59 = vpack.c.bf16 %v809_v58, %v808_v57 }
 0x178   :  { %1354 = vmatpush3.bf16.msra.mxu1 %v1353_v1  ;;  %v969_v1 = vld [vmem:[%s1658_s6] ss:$0 sm:$0xff] }
 0x179   :  { %1356 = vmatprep.subr.bf16.mxu1 %v1355_v2 }
 0x17c   :  { %1358 = vmatpush3.bf16.msra.mxu1 %v1357_v7 }
 0x17d   :  { %1360 = vmatprep.subr.bf16.mxu1 %v1359_v9 }
 0x180   :  { %1362 = vmatpush3.bf16.msra.mxu1 %v1361_v12 }
 0x181   :  { %1364 = vmatprep.subr.bf16.mxu1 %v1363_v15 }
 0x184   :  { %1366 = vmatpush3.bf16.msra.mxu1 %v1365_v19 }
 0x185   :  { %1367 = vmatprep.subr.bf16.mxu1 %v1515_v20 }
 0x203   :  { %v1002_v21 = vpop.f32.mrb[2].mxu1 }
 0x204   :  { %v1003_v22 = vpop.f32.mrb[3].mxu1 }
 0x205   :  { %v1004_v23 = vadd.f32 %v1003_v22, %v1002_v21 }
 0x207   :  { %v686_v28 = vadd.f32 %v1004_v23, %v473_v25 }
 0x223   :  { %v1037_v26 = vpop.f32.mrb[4].mxu1 }
 0x224   :  { %v1038_v27 = vpop.f32.mrb[5].mxu1 }
 0x225   :  { %v1039_v29 = vadd.f32 %v1038_v27, %v1037_v26 }
 0x227   :  { %v756_v30 = vadd.f32 %v1039_v29, %v686_v28 }
 0x229   :  { %v761_v60 = vmax.f32 %v756_v30, 0.0 }
 0x243   :  { %v614_v33 = vpop.f32.mrb[2].mxu0 }
 0x244   :  { %v1391_v34 = vadd.f32 %v614_v33, %v465_v31  ;;  %v616_v35 = vpop.f32.mrb[3].mxu0 }
 0x245   :  { %v1392_v38 = vadd.f32 %v616_v35, %v469_v32 }
 0x246   :  { %v759_v16 = vmax.f32 %v1391_v34, 0.0 }
 0x247   :  { %v760_v39 = vmax.f32 %v1392_v38, 0.0 }
 0x249   :  { %881 = vmatprep.mubr.f32.mxu1 %v760_v39 }
 0x24a   :  { %882 = vmatmul.mubr.f32.vlgmr.msra.gmra.mrb[6].mxu1 %v759_v16 }
 0x24b   :  { %1369 = vmatpush3.bf16.msra.mxu1 %v1368_v40  ;;  %1124 = vmatprep.mubr.msk.f32.mxu1 %vm1516_vm1, %v1514_v0  ;;  %v1383_v0 = vpack.c.bf16 %v805_v8, %v804_v49 }
 0x24c   :  { %1370 = vmatprep.subr.bf16.mxu1 %v1515_v20 }
 0x24f   :  { %1372 = vmatpush3.bf16.msra.mxu1 %v1371_v42 }
 0x250   :  { %1373 = vmatprep.subr.bf16.mxu1 %v1515_v20 }
 0x253   :  { %1375 = vmatpush3.bf16.msra.mxu1 %v1374_v54 }
 0x254   :  { %1376 = vmatprep.subr.bf16.mxu1 %v1515_v20 }
 0x257   :  { %1378 = vmatpush3.bf16.msra.mxu1 %v1377_v45 }
 0x258   :  { %1379 = vmatprep.subr.bf16.mxu1 %v1515_v20 }
 0x25b   :  { %1381 = vmatpush3.bf16.msra.mxu1 %v1380_v48 }
 0x25c   :  { %1382 = vmatprep.subr.bf16.mxu1 %v1515_v20 }
 0x25f   :  { %1384 = vmatpush3.bf16.msra.mxu1 %v1383_v0 }
 0x260   :  { %1385 = vmatprep.subr.bf16.mxu1 %v1515_v20 }
 0x263   :  { %1387 = vmatpush3.bf16.msra.mxu1 %v1386_v56 }
 0x264   :  { %1388 = vmatprep.subr.bf16.mxu1 %v1515_v20 }
 0x267   :  { %1390 = vmatpush3.bf16.msra.mxu1 %v1389_v59 }
 0x26a   :  { %1125 = vmatmul.mubr.f32.vlgmr.msra.gmra.mrb[8].mxu1 %v761_v60 }
 0x31d   :  { %v1072_v61 = vpop.f32.mrb[6].mxu1 }
 0x31e   :  { %v1073_v62 = vpop.f32.mrb[7].mxu1 }
 0x31f   :  { %v1074_v63 = vadd.f32 %v1073_v62, %v1072_v61 }
 0x321   :  { %v884_v2 = vadd.f32 %v1074_v63, %v969_v1 }
 0x33d   :  { %v953_v3 = vpop.f32.mrb[8].mxu1 }
 0x33e   :  { %v954_v4 = vadd.f32 %v953_v3, %v884_v2  ;;  %v1126_v5 = vpop.f32.mrb[9].mxu1 }
 0x340   :  { %1408 = vtanh.f32 %v954_v4 }
 0x34a   :  { %v1409_v6 = vpop.eup %1408 }
 0x34b   :  { %959 = vst.msk [vmem:[%s1659_s7] sm:$0xff] %vm958_vm2, %v1409_v6 }
 0x34c   :  { %964 = vsyncpa [#allocation3], 1 }
 0x34d   :  { %965 = vsyncpa [#allocation5], 1 }
 0x34e   :  { %966 = vsyncpa [#allocation8], 1 }

</bundles_post_ra>
